<compile_context>
chip_gen: v5e
topology: v5e:2x2
jax: 0.10.0
libtpu: 0.0.40
codegen_flags: <defaults>
</compile_context>

<pallas_src>
import functools

import jax
import jax.numpy as jnp
import numpy as np
from jax.experimental import pallas as pl
from jax.experimental.pallas import tpu as pltpu

# 48 MiB scoped VMEM: fits every TPU generation (v7x has 64 MiB physical per TensorCore).
_VMEM_LIMIT = 48 * 1024 * 1024
_VMEM_SPEC = pl.BlockSpec(memory_space=pltpu.MemorySpace.VMEM)


def _cp(*dim_sem):
    return pltpu.CompilerParams(
        dimension_semantics=dim_sem if dim_sem else None,
        vmem_limit_bytes=_VMEM_LIMIT,
    )


def _round_up(x, m):
    return (x + m - 1) // m * m


# --------------------------- tiled fused GEMM (+bias +ReLU +residual) ---------------------------

def _gemm_kernel(x_ref, w_ref, b_ref, o_ref, acc_ref, *, relu):
    @pl.when(pl.program_id(2) == 0)
    def _():
        acc_ref[...] = jnp.zeros_like(acc_ref)

    acc_ref[...] += jnp.dot(x_ref[...], w_ref[...], preferred_element_type=jnp.float32)

    @pl.when(pl.program_id(2) == pl.num_programs(2) - 1)
    def _():
        out = acc_ref[...] + b_ref[...]
        if relu:
            out = jnp.maximum(out, 0.0)
        o_ref[...] = out.astype(o_ref.dtype)


def _gemm_res_kernel(x_ref, w_ref, b_ref, res_ref, o_ref, acc_ref, *, relu):
    # Same as above but fuses the bottleneck residual add into the epilogue.
    @pl.when(pl.program_id(2) == 0)
    def _():
        acc_ref[...] = jnp.zeros_like(acc_ref)

    acc_ref[...] += jnp.dot(x_ref[...], w_ref[...], preferred_element_type=jnp.float32)

    @pl.when(pl.program_id(2) == pl.num_programs(2) - 1)
    def _():
        out = acc_ref[...] + b_ref[...] + res_ref[...].astype(jnp.float32)
        if relu:
            out = jnp.maximum(out, 0.0)
        o_ref[...] = out.astype(o_ref.dtype)


def _pick_tm(m_pad):
    for cand in (256, 128, 64, 32, 16, 8):
        if m_pad % cand == 0:
            return cand
    return m_pad


def _pick_tn(n):
    for cand in (256, 128):
        if n % cand == 0:
            return cand
    return n  # small channel counts (e.g. 64): single full-width block


def _pick_tk(k):
    # Prefer a 128-multiple tile that divides K exactly; otherwise keep K as one
    # aligned block (pad K up to a multiple of 16, e.g. conv1's 147 -> 160).
    for cand in (512, 384, 256, 128):
        if k % cand == 0:
            return cand, k
    if k <= 1024:
        kp = _round_up(k, 16)
        return kp, kp
    return 512, _round_up(k, 512)


def matmul_bias_act(x, w, b, *, relu, residual=None, out_dtype=jnp.bfloat16):
    """out = act(x @ w + b [+ residual]); bf16 MXU inputs, f32 accumulate/epilogue."""
    m, k = x.shape
    k2, n = w.shape
    assert k == k2
    x = x.astype(jnp.bfloat16)
    w = w.astype(jnp.bfloat16)
    b = b.reshape(1, n).astype(jnp.float32)

    m_pad = _round_up(m, 8)
    tm = _pick_tm(m_pad)
    tn = _pick_tn(n)
    tk, k_pad = _pick_tk(k)

    if m_pad != m or k_pad != k:
        x = jnp.pad(x, ((0, m_pad - m), (0, k_pad - k)))
    if k_pad != k:
        w = jnp.pad(w, ((0, k_pad - k), (0, 0)))

    gm, gn, gk = m_pad // tm, n // tn, k_pad // tk

    in_specs = [
        pl.BlockSpec((tm, tk), lambda i, j, kk: (i, kk)),
        pl.BlockSpec((tk, tn), lambda i, j, kk: (kk, j)),
        pl.BlockSpec((1, tn), lambda i, j, kk: (0, j)),
    ]
    args = [x, w, b]
    if residual is not None:
        res = residual.astype(jnp.bfloat16)
        if m_pad != m:
            res = jnp.pad(res, ((0, m_pad - m), (0, 0)))
        in_specs.append(pl.BlockSpec((tm, tn), lambda i, j, kk: (i, j)))
        args.append(res)
        kernel = functools.partial(_gemm_res_kernel, relu=relu)
    else:
        kernel = functools.partial(_gemm_kernel, relu=relu)

    out = pl.pallas_call(
        kernel,
        out_shape=jax.ShapeDtypeStruct((m_pad, n), out_dtype),
        grid_spec=pltpu.PrefetchScalarGridSpec(
            num_scalar_prefetch=0,
            grid=(gm, gn, gk),
            in_specs=in_specs,
            out_specs=pl.BlockSpec((tm, tn), lambda i, j, kk: (i, j)),
            scratch_shapes=[pltpu.VMEM((tm, tn), jnp.float32)],
        ),
        compiler_params=_cp("parallel", "parallel", "arbitrary"),
    )(*args)
    return out[:m] if m_pad != m else out


# --------------------------- max-pool 3x3 / stride 2 / pad 1 ---------------------------

def _maxpool_kernel(x_ref, o_ref, *, ho, wo):
    # x_ref: (2, 2, 1, ho+1, wo+1, C) -- row/col parity split of the padded map.
    x = x_ref[...]
    best = None
    for di in range(3):
        hq, hr = divmod(di, 2)
        for dj in range(3):
            wq, wr = divmod(dj, 2)
            tap = x[hr, wr, :, hq:hq + ho, wq:wq + wo, :]
            best = tap if best is None else jnp.maximum(best, tap)
    o_ref[...] = best


def max_pool_3x3_s2_p1(x):
    n, h, w, c = x.shape
    ho, wo = h // 2, w // 2
    pad_val = float(jnp.finfo(x.dtype).min)
    xp = jnp.pad(x, ((0, 0), (1, 1), (1, 1), (0, 0)), constant_values=pad_val)
    # Even/odd split is a free reshape; one transpose pass replaces the old 9x HBM tap stack.
    x6 = xp.reshape(n, ho + 1, 2, wo + 1, 2, c).transpose(2, 4, 0, 1, 3, 5)
    return pl.pallas_call(
        functools.partial(_maxpool_kernel, ho=ho, wo=wo),
        out_shape=jax.ShapeDtypeStruct((n, ho, wo, c), x.dtype),
        grid=(n,),
        in_specs=[pl.BlockSpec((2, 2, 1, ho + 1, wo + 1, c),
                               lambda i: (0, 0, i, 0, 0, 0))],
        out_specs=pl.BlockSpec((1, ho, wo, c), lambda i: (i, 0, 0, 0)),
        compiler_params=_cp("parallel"),
    )(x6)


# --------------------------- fused avg-pool + MLP head ---------------------------

def _head_kernel(x_ref, *refs):
    # x_ref: (Np, H*W, 2048). refs = (w1,b1,w2,b2,w3,b3,w4,b4, o_ref).
    o_ref = refs[-1]
    wb = refs[:-1]
    feat = jnp.mean(x_ref[...].astype(jnp.float32), axis=1)  # adaptive avgpool (1,1) + flatten
    h = feat
    n_layers = len(wb) // 2
    for li in range(n_layers):
        w_ref, b_ref = wb[2 * li], wb[2 * li + 1]
        h = jnp.dot(h.astype(jnp.bfloat16), w_ref[...],
                    preferred_element_type=jnp.float32) + b_ref[...]
        if li < n_layers - 1:
            h = jnp.maximum(h, 0.0)
            # nn.Dropout is the identity at inference (eval) time; no RNG applied.
    o_ref[...] = h


def mlp_head(x, fc):
    n, hw, c = x.shape
    n_pad = _round_up(max(n, 8), 8)
    xb = x.astype(jnp.bfloat16)
    if n_pad != n:
        xb = jnp.pad(xb, ((0, n_pad - n), (0, 0), (0, 0)))
    args = [xb]
    for wgt, bias in fc:
        args.extend([wgt, bias])
    n_out = fc[-1][0].shape[1]  # final layer padded to 128 lanes; real output is col 0
    out = pl.pallas_call(
        _head_kernel,
        out_shape=jax.ShapeDtypeStruct((n_pad, n_out), jnp.float32),
        in_specs=[_VMEM_SPEC] * len(args),
        out_specs=_VMEM_SPEC,
        compiler_params=_cp(),
    )(*args)
    return out[:n, :1]


# --------------------------- conv / bottleneck glue ---------------------------

def conv_bn(x, blk, *, stride, relu, residual=None):
    """Conv2d(bias=False) + folded BatchNorm (+ReLU) (+fused residual). x is NHWC bf16."""
    kh, kw, cin, cout = blk["kh"], blk["kw"], blk["cin"], blk["cout"]
    n, h, wd, c = x.shape
    assert c == cin
    if kh == 1 and kw == 1:
        # TODO(synk): express the stride-2 subsample in the GEMM LHS index_map instead of a
        #             host-side strided gather.
        xs = x if stride == 1 else x[:, ::stride, ::stride, :]
        ho, wo = xs.shape[1], xs.shape[2]
        cols = xs.reshape(n * ho * wo, cin)
    else:
        pad = kh // 2  # 7x7 -> pad 3, 3x3 -> pad 1 (matches torchvision ResNet)
        xp = jnp.pad(x, ((0, 0), (pad, pad), (pad, pad), (0, 0)))
        ho = (h + 2 * pad - kh) // stride + 1
        wo = (wd + 2 * pad - kw) // stride + 1
        taps = [xp[:, di:di + ho * stride:stride, dj:dj + wo * stride:stride, :]
                for di in range(kh) for dj in range(kw)]
        # im2col in bf16 (half the HBM traffic of the old f32 path).
        cols = jnp.concatenate(taps, axis=-1).reshape(n * ho * wo, kh * kw * cin)
    res2d = residual.reshape(n * ho * wo, cout) if residual is not None else None
    out = matmul_bias_act(cols, blk["w"], blk["b"], relu=relu, residual=res2d)
    return out.reshape(n, ho, wo, cout)


def bottleneck(x, blk):
    # TODO(synk): fuse all three GEMMs (+downsample) of a block into one pallas_call via
    #             pltpu.emit_pipeline to cut launch count further.
    if blk["down"] is not None:
        identity = conv_bn(x, blk["down"], stride=blk["stride"], relu=False)
    else:
        identity = x
    out = conv_bn(x, blk["conv1"], stride=1, relu=True)
    out = conv_bn(out, blk["conv2"], stride=blk["stride"], relu=True)
    # conv3 + BN + residual add + ReLU fused into a single GEMM epilogue.
    return conv_bn(out, blk["conv3"], stride=1, relu=True, residual=identity)


# --------------------------- deterministic parameter init ---------------------------

class _KeyGen:
    def __init__(self, key):
        self._key = key

    def __call__(self):
        self._key, sub = jax.random.split(self._key)
        return sub


def _make_conv_bn(kg, kh, kw, cin, cout):
    # Conv weight (HWIO) + BatchNorm (eval stats) folded into an effective (w, b); w stored
    # pre-reshaped to (kh*kw*cin, cout) in bf16 for the MXU, bias kept in f32.
    w = jax.random.normal(kg(), (kh, kw, cin, cout), jnp.float32) * (1.0 / np.sqrt(kh * kw * cin))
    gamma = 1.0 + 0.1 * jax.random.normal(kg(), (cout,), jnp.float32)
    beta = 0.05 * jax.random.normal(kg(), (cout,), jnp.float32)
    running_mean = jnp.zeros((cout,), jnp.float32)
    running_var = jnp.ones((cout,), jnp.float32)
    scale = gamma / jnp.sqrt(running_var + 1e-5)
    w_eff = (w * scale).reshape(kh * kw * cin, cout).astype(jnp.bfloat16)
    b_eff = (beta - running_mean * scale).astype(jnp.float32)
    return {"w": w_eff, "b": b_eff, "kh": kh, "kw": kw, "cin": cin, "cout": cout}


def _make_linear(kg, fin, fout, pad_out_to=None):
    w = jax.random.normal(kg(), (fin, fout), jnp.float32) * (1.0 / np.sqrt(fin))
    b = 0.01 * jax.random.normal(kg(), (fout,), jnp.float32)
    if pad_out_to is not None and pad_out_to > fout:
        w = jnp.pad(w, ((0, 0), (0, pad_out_to - fout)))
        b = jnp.pad(b, (0, pad_out_to - fout))
    return (w.astype(jnp.bfloat16), b.reshape(1, -1).astype(jnp.float32))


def init_params(seed=42, hidden_sizes=(1024, 512, 1024)):
    # Synthetic deterministic weights with the exact ResNet-50 topology.
    # (IMAGENET1K_V1 pretrained checkpoint is NOT loaded — no file/network access here.)
    kg = _KeyGen(jax.random.PRNGKey(seed))
    params = {"conv1": _make_conv_bn(kg, 7, 7, 3, 64)}
    inplanes = 64
    layers_cfg = [(64, 3, 1), (128, 4, 2), (256, 6, 2), (512, 3, 2)]
    for li, (planes, blocks, stride) in enumerate(layers_cfg, start=1):
        layer = []
        for bi in range(blocks):
            s = stride if bi == 0 else 1
            down = None
            if bi == 0 and (s != 1 or inplanes != planes * 4):
                down = _make_conv_bn(kg, 1, 1, inplanes, planes * 4)
            layer.append({
                "conv1": _make_conv_bn(kg, 1, 1, inplanes, planes),
                "conv2": _make_conv_bn(kg, 3, 3, planes, planes),
                "conv3": _make_conv_bn(kg, 1, 1, planes, planes * 4),
                "down": down,
                "stride": s,
            })
            inplanes = planes * 4
        params[f"layer{li}"] = layer
    # MLP head replacing resnet.fc: 2048 -> 1024 -> 512 -> 1024 -> 1 (last layer padded to 128
    # output lanes to keep the store lane-dense; real scalar output is column 0).
    fc = []
    fin = inplanes
    for hs in hidden_sizes:
        fc.append(_make_linear(kg, fin, hs))
        fin = hs
    fc.append(_make_linear(kg, fin, 1, pad_out_to=128))
    params["fc"] = fc
    return params


# --------------------------- forward pass ---------------------------

def revenue_predictor_forward(x_nchw, params):
    x = jnp.transpose(x_nchw, (0, 2, 3, 1)).astype(jnp.bfloat16)  # NCHW -> NHWC, bf16 activations
    x = conv_bn(x, params["conv1"], stride=2, relu=True)
    x = max_pool_3x3_s2_p1(x)
    for li in range(1, 5):
        for blk in params[f"layer{li}"]:
            x = bottleneck(x, blk)
    n, h, w, c = x.shape
    return mlp_head(x.reshape(n, h * w, c), params["fc"])  # (N, 1) f32


if __name__ == "__main__":
    params = init_params(seed=42)
    x = jax.random.normal(jax.random.PRNGKey(0), (2, 3, 32, 32), jnp.float32)
    y = revenue_predictor_forward(x, params)
    y = jax.block_until_ready(y)
    assert y.shape == (2, 1), y.shape
    assert bool(jnp.all(jnp.isfinite(y)))
    print("KERNEL_OK")
</pallas_src>

<mosaic_0001>
module attributes {stable_mosaic.version = 11 : i64} {
  func.func @_gemm_kernel(%arg0: i32, %arg1: i32, %arg2: i32, %arg3: memref<256x160xbf16, #tpu.memory_space<vmem>>, %arg4: memref<160x64xbf16, #tpu.memory_space<vmem>>, %arg5: memref<1x64xf32, #tpu.memory_space<vmem>>, %arg6: memref<256x64xbf16, #tpu.memory_space<vmem>>, %arg7: memref<256x64xf32, #tpu.memory_space<vmem>>) attributes {dimension_semantics = [#tpu.dimension_semantics<parallel>, #tpu.dimension_semantics<parallel>, #tpu.dimension_semantics<arbitrary>], iteration_bounds = array<i64: 2, 1, 1>, scalar_prefetch = 0 : i64, scratch_operands = 1 : i64, tpu.core_type = #tpu.core_type<tc>, window_params = [{transform_indices = @transform_0, window_bounds = array<i64: 256, 160>}, {transform_indices = @transform_1, window_bounds = array<i64: 160, 64>}, {transform_indices = @transform_2, window_bounds = array<i64: 1, 64>}, {transform_indices = @transform_3, window_bounds = array<i64: 256, 64>}]} {
    %c0_i32 = arith.constant 0 : i32
    %0 = arith.cmpi eq, %arg2, %c0_i32 : i32
    %1 = arith.extui %0 : i1 to i32
    %c0_i32_0 = arith.constant 0 : i32
    %2 = arith.cmpi ne, %1, %c0_i32_0 : i32
    scf.if %2 {
      %cst_10 = arith.constant 0.000000e+00 : f32
      %12 = vector.broadcast %cst_10 : f32 to vector<256x64xf32>
      %c0_11 = arith.constant 0 : index
      %c0_12 = arith.constant 0 : index
      %13 = vector.load %arg7[%c0_11, %c0_12] : memref<256x64xf32, #tpu.memory_space<vmem>>, vector<256x64xf32>
      tpu.vector_store %arg7[%c0_11, %c0_12], %12 {strides = array<i32>} : memref<256x64xf32, #tpu.memory_space<vmem>>, vector<256x64xf32>,
    } else {
    }
    %c0 = arith.constant 0 : index
    %c0_1 = arith.constant 0 : index
    %3 = vector.load %arg7[%c0, %c0_1] : memref<256x64xf32, #tpu.memory_space<vmem>>, vector<256x64xf32>
    %c0_2 = arith.constant 0 : index
    %c0_3 = arith.constant 0 : index
    %4 = vector.load %arg3[%c0_2, %c0_3] : memref<256x160xbf16, #tpu.memory_space<vmem>>, vector<256x160xbf16>
    %c0_4 = arith.constant 0 : index
    %c0_5 = arith.constant 0 : index
    %5 = vector.load %arg4[%c0_4, %c0_5] : memref<160x64xbf16, #tpu.memory_space<vmem>>, vector<160x64xbf16>
    %cst = arith.constant dense<0.000000e+00> : vector<256x64xf32>
    %6 = tpu.matmul %4, %5, %cst {dimension_numbers = #tpu.dot_dimension_numbers<[1], [0], [0], [1], [0, 0, 1, 1], [], []>} : vector<256x160xbf16>, vector<160x64xbf16>, vector<256x64xf32> -> vector<256x64xf32>
    %7 = arith.addf %3, %6 : vector<256x64xf32>
    %c0_6 = arith.constant 0 : index
    %c0_7 = arith.constant 0 : index
    %8 = vector.load %arg7[%c0_6, %c0_7] : memref<256x64xf32, #tpu.memory_space<vmem>>, vector<256x64xf32>
    tpu.vector_store %arg7[%c0_6, %c0_7], %7 {strides = array<i32>} : memref<256x64xf32, #tpu.memory_space<vmem>>, vector<256x64xf32>,
    %c0_i32_8 = arith.constant 0 : i32
    %9 = arith.cmpi eq, %arg2, %c0_i32_8 : i32
    %10 = arith.extui %9 : i1 to i32
    %c0_i32_9 = arith.constant 0 : i32
    %11 = arith.cmpi ne, %10, %c0_i32_9 : i32
    scf.if %11 {
      %c0_10 = arith.constant 0 : index
      %c0_11 = arith.constant 0 : index
      %12 = vector.load %arg7[%c0_10, %c0_11] : memref<256x64xf32, #tpu.memory_space<vmem>>, vector<256x64xf32>
      %c0_12 = arith.constant 0 : index
      %c0_13 = arith.constant 0 : index
      %13 = vector.load %arg5[%c0_12, %c0_13] : memref<1x64xf32, #tpu.memory_space<vmem>>, vector<1x64xf32>
      %14 = vector.broadcast %13 : vector<1x64xf32> to vector<256x64xf32>
      %15 = arith.addf %12, %14 : vector<256x64xf32>
      %cst_14 = arith.constant 0.000000e+00 : f32
      %16 = vector.broadcast %cst_14 : f32 to vector<256x64xf32>
      %17 = arith.maximumf %15, %16 : vector<256x64xf32>
      %18 = arith.truncf %17 : vector<256x64xf32> to vector<256x64xbf16>
      %c0_15 = arith.constant 0 : index
      %c0_16 = arith.constant 0 : index
      %19 = vector.load %arg6[%c0_15, %c0_16] : memref<256x64xbf16, #tpu.memory_space<vmem>>, vector<256x64xbf16>
      tpu.vector_store %arg6[%c0_15, %c0_16], %18 {strides = array<i32>} : memref<256x64xbf16, #tpu.memory_space<vmem>>, vector<256x64xbf16>,
    } else {
    }
    return
  }
  func.func @transform_0(%arg0: i32, %arg1: i32, %arg2: i32) -> (i32, i32) {
    %c0_i32 = arith.constant 0 : i32
    return %arg0, %arg2 : i32, i32
  }
  func.func @transform_1(%arg0: i32, %arg1: i32, %arg2: i32) -> (i32, i32) {
    %c0_i32 = arith.constant 0 : i32
    return %arg2, %arg1 : i32, i32
  }
  func.func @transform_2(%arg0: i32, %arg1: i32, %arg2: i32) -> (i32, i32) {
    %c0_i32 = arith.constant 0 : i32
    %c0_i32_0 = arith.constant 0 : i32
    return %c0_i32, %arg1 : i32, i32
  }
  func.func @transform_3(%arg0: i32, %arg1: i32, %arg2: i32) -> (i32, i32) {
    %c0_i32 = arith.constant 0 : i32
    return %arg0, %arg1 : i32, i32
  }
}

</mosaic_0001>

<bundles_post_ra>
// kernel: tpu_custom_call.1
= control target key start
LH: loop header
LB: loop body
LE: loop exit
PB: predicated region body
PF: predicated region fallthrough
CT: control target
= control target key end

     0   :  { %s1489_s12 = smov 0   ;;  %s1491_s13 = smov 0   ;;  %s1838_s0 = inlined_call_operand.vmem [shape: bf16[512,160], index: 0, kind: input, shape index: {}]   ;;  %s1839_s1 = inlined_call_operand.vmem [shape: bf16[160,64], index: 1, kind: input, shape index: {}]   ;;  %s1840_s2 = inlined_call_operand.vmem [shape: f32[1,64], index: 2, kind: input, shape index: {}]   ;;  %s1841_s3 = inlined_call_operand.vmem [shape: bf16[512,64], index: 3, kind: output, shape index: {}]  }
   0x1   :  { %s1493_s14 = smov 0  }
   0x2 LB: > { %s32_s15 = sadd.s32 1, %s1462_s13  ;;  %p1173_p0 = scmp.ge.s32.totalorder %s1466_s14, 1  ;;  %s1466_s14 = sphi %s1493_s14, %s13_s14   ;;  %s1462_s13 = sphi %s1491_s13, %s1843_s13   ;;  %s1458_s12 = sphi %s1489_s12, %s1842_s12  }
   0x3   : > { %p34_p1 = scmp.ge.s32.totalorder %s32_s15, 2  ;;  %p191_p2 = scmp.lt.s32.totalorder %s1466_s14, 3 }
   0x5   : > { %s1845_s15 = smov (%p34_p1, %s32_s15), 0  ;;  %p192_p3 = pnand %p1173_p0, %p191_p2 }
   0x6   : > { %s1174_s20 = sshll.u32 (!%p192_p3), %s1458_s12, 5 }
   0x7   : > { %195 = sbr.rel (%p192_p3) target bundleno = 317 (0x13d), region = 32  ;;  %p236_p4 = scmp.lt.s32.totalorder (!%p192_p3), %s1174_s20, 63 }
   0xc   : > { %v1405_v0 = vld [vmem:[%s1839_s1 + $0x38] sm:$0xff]  ;;  %v1407_v1 = vld [vmem:[%s1839_s1 + $0x48] sm:$0xff]  ;;  %v1404_v2 = vld [vmem:[%s1839_s1 + $0x30] sm:$0xff]  ;;  %s1847_s20 = smov (!%p236_p4, %s1174_s20), 63  ;;  %vm593_vm0 = vcmask 261120   ;;  %vm272_vm1 = vcmask 523264  }
   0xd   : > { %642 = vmatpush.bf16.msra.mxu0 %v1405_v0  ;;  %1408 = vmatpush.bf16.msra.mxu2 %v1405_v0  ;;  %v1406_v3 = vld [vmem:[%s1839_s1 + $0x40] sm:$0xff]  ;;  %s1365_s25 = sshll.u32 %s1847_s20, 3  ;;  %v1403_v4 = vld [vmem:[%s1839_s1 + $0x28] sm:$0xff]  ;;  %v1401_v12 = vld [vmem:[%s1839_s1 + $0x18] sm:$0xff]  ;;  %s1178_s19 = sshll.u32 %s1847_s20, 2  ;;  %vm1020_vm2 = vcmask 519168  }
   0xe   : > { %737 = vmatpush.bf16.msra.mxu1 %v1407_v1  ;;  %1416 = vmatpush.bf16.msra.mxu3 %v1407_v1  ;;  %s1525_s28 = scalar_lea.vmem %s1838_s0, %s1365_s25  ;;  %v1402_v8 = vld [vmem:[%s1839_s1 + $0x20] sm:$0xff]  ;;  %v1400_v13 = vld [vmem:[%s1839_s1 + $0x10] sm:$0xff]  ;;  %v1399_v17 = vld [vmem:[%s1839_s1 + $0x8] sm:$0xff]  ;;  %s1673_s23 = scalar_lea.vmem %s1841_s3, %s1178_s19 }
   0xf   : > { %v1366_v5 = vld [vmem:[%s1525_s28 + $0x4] sm:$0xf]  ;;  %v1183_v6 = vld [vmem:[%s1525_s28 + $0x8] sm:$0xf0]  ;;  %v1384_v9 = vld [vmem:[%s1525_s28 + $0x94] sm:$0xf] }
  0x10   : > { %v1186_v7 = vor.u32 %v1366_v5, %v1183_v6  ;;  %v1255_v10 = vld [vmem:[%s1525_s28 + $0x98] sm:$0xf0]  ;;  %v1368_v14 = vld [vmem:[%s1525_s28 + $0x14] sm:$0xf]  ;;  %v1386_v18 = vld [vmem:[%s1525_s28 + $0xa4] sm:$0xf] }
  0x11   : > { %643 = vmatpush.bf16.msra.mxu0 %v1404_v2  ;;  %1409 = vmatpush.bf16.msra.mxu2 %v1404_v2  ;;  %v1258_v11 = vor.u32 %v1384_v9, %v1255_v10  ;;  %v1191_v15 = vld [vmem:[%s1525_s28 + $0x18] sm:$0xf0]  ;;  %v1263_v19 = vld [vmem:[%s1525_s28 + $0xa8] sm:$0xf0]  ;;  %v1398_v21 = vld [vmem:[%s1839_s1] sm:$0xff] }
  0x12   : > { %738 = vmatpush.bf16.msra.mxu1 %v1406_v3  ;;  %1417 = vmatpush.bf16.msra.mxu3 %v1406_v3  ;;  %v1194_v16 = vor.u32 %v1368_v14, %v1191_v15  ;;  %v1266_v20 = vor.u32 %v1386_v18, %v1263_v19  ;;  %v1181_v22 = vld [vmem:[%s1525_s28] sm:$0xf]  ;;  %v1367_v23 = vld [vmem:[%s1525_s28 + $0x4] sm:$0xf0]  ;;  %v1370_v28 = vld [vmem:[%s1525_s28 + $0x24] sm:$0xf] }
  0x13   : > { %v1245_v24 = vld [vmem:[%s1525_s28 + $0x80] sm:$0xf]  ;;  %v1383_v25 = vld [vmem:[%s1525_s28 + $0x84] sm:$0xf0]  ;;  %v1182_v26 = vor.u32 %v1367_v23, %v1181_v22  ;;  %v1199_v29 = vld [vmem:[%s1525_s28 + $0x28] sm:$0xf0] }
  0x14   : > { %v1246_v27 = vor.u32 %v1383_v25, %v1245_v24  ;;  %v1202_v30 = vor.u32 %v1370_v28, %v1199_v29  ;;  %v1388_v31 = vld [vmem:[%s1525_s28 + $0xb4] sm:$0xf]  ;;  %v1271_v32 = vld [vmem:[%s1525_s28 + $0xb8] sm:$0xf0]  ;;  %v1189_v34 = vld [vmem:[%s1525_s28 + $0x10] sm:$0xf] }
  0x15   : > { %1347 = vmatmul.msk.bf16.vlgmr.msra.gmra.mxu1 %vm593_vm0, %v1186_v7  ;;  %644 = vmatpush.bf16.msra.mxu0 %v1403_v4  ;;  %v1274_v33 = vor.u32 %v1388_v31, %v1271_v32  ;;  %v1369_v35 = vld [vmem:[%s1525_s28 + $0x14] sm:$0xf0]  ;;  %v1253_v36 = vld [vmem:[%s1525_s28 + $0x90] sm:$0xf]  ;;  %v1372_v40 = vld [vmem:[%s1525_s28 + $0x34] sm:$0xf] }
  0x16   : > { %1410 = vmatpush.bf16.msra.mxu2 %v1403_v4  ;;  %1356 = vmatmul.msk.bf16.vlgmr.msra.gmra.mxu3 %vm593_vm0, %v1258_v11  ;;  %v1385_v37 = vld [vmem:[%s1525_s28 + $0x94] sm:$0xf0]  ;;  %v1190_v38 = vor.u32 %v1369_v35, %v1189_v34  ;;  %v1207_v41 = vld [vmem:[%s1525_s28 + $0x38] sm:$0xf0]  ;;  %v1390_v43 = vld [vmem:[%s1525_s28 + $0xc4] sm:$0xf] }
  0x17   : > { %v1254_v39 = vor.u32 %v1385_v37, %v1253_v36  ;;  %v1210_v42 = vor.u32 %v1372_v40, %v1207_v41  ;;  %v1279_v44 = vld [vmem:[%s1525_s28 + $0xc8] sm:$0xf0]  ;;  %v1197_v46 = vld [vmem:[%s1525_s28 + $0x20] sm:$0xf]  ;;  %v1371_v47 = vld [vmem:[%s1525_s28 + $0x24] sm:$0xf0] }
  0x18   : > { %v1282_v45 = vor.u32 %v1390_v43, %v1279_v44  ;;  %v1261_v48 = vld [vmem:[%s1525_s28 + $0xa0] sm:$0xf]  ;;  %v1387_v49 = vld [vmem:[%s1525_s28 + $0xa4] sm:$0xf0]  ;;  %v1198_v50 = vor.u32 %v1371_v47, %v1197_v46  ;;  %v1374_v52 = vld [vmem:[%s1525_s28 + $0x44] sm:$0xf] }
  0x19   : > { %645 = vmatpush.bf16.msra.mxu0 %v1402_v8  ;;  %v1262_v51 = vor.u32 %v1387_v49, %v1261_v48  ;;  %v1215_v53 = vld [vmem:[%s1525_s28 + $0x48] sm:$0xf0]  ;;  %v1392_v55 = vld [vmem:[%s1525_s28 + $0xd4] sm:$0xf]  ;;  %v1287_v56 = vld [vmem:[%s1525_s28 + $0xd8] sm:$0xf0] }
  0x1a   : > { %1411 = vmatpush.bf16.msra.mxu2 %v1402_v8  ;;  %v1218_v54 = vor.u32 %v1374_v52, %v1215_v53  ;;  %v1290_v57 = vor.u32 %v1392_v55, %v1287_v56  ;;  %v1205_v58 = vld [vmem:[%s1525_s28 + $0x30] sm:$0xf]  ;;  %v1373_v59 = vld [vmem:[%s1525_s28 + $0x34] sm:$0xf0]  ;;  %v1376_v0 = vld [vmem:[%s1525_s28 + $0x54] sm:$0xf] }
  0x1b   : > { %v1269_v60 = vld [vmem:[%s1525_s28 + $0xb0] sm:$0xf]  ;;  %v1389_v61 = vld [vmem:[%s1525_s28 + $0xb4] sm:$0xf0]  ;;  %v1206_v62 = vor.u32 %v1373_v59, %v1205_v58  ;;  %v1223_v1 = vld [vmem:[%s1525_s28 + $0x58] sm:$0xf0] }
  0x1c   : > { %v1270_v63 = vor.u32 %v1389_v61, %v1269_v60  ;;  %v1226_v2 = vor.u32 %v1376_v0, %v1223_v1  ;;  %v1394_v3 = vld [vmem:[%s1525_s28 + $0xe4] sm:$0xf]  ;;  %v1295_v4 = vld [vmem:[%s1525_s28 + $0xe8] sm:$0xf0]  ;;  %v1213_v6 = vld [vmem:[%s1525_s28 + $0x40] sm:$0xf] }
  0x1d   : > { %646 = vmatpush.bf16.msra.mxu0 %v1401_v12  ;;  %v1298_v5 = vor.u32 %v1394_v3, %v1295_v4  ;;  %v1375_v7 = vld [vmem:[%s1525_s28 + $0x44] sm:$0xf0]  ;;  %v1277_v8 = vld [vmem:[%s1525_s28 + $0xc0] sm:$0xf]  ;;  %v1396_v15 = vld [vmem:[%s1525_s28 + $0xf4] sm:$0xf] }
  0x1e   : > { %1412 = vmatpush.bf16.msra.mxu2 %v1401_v12  ;;  %v1391_v9 = vld [vmem:[%s1525_s28 + $0xc4] sm:$0xf0]  ;;  %v1214_v10 = vor.u32 %v1375_v7, %v1213_v6  ;;  %v1378_v12 = vld [vmem:[%s1525_s28 + $0x64] sm:$0xf]  ;;  %v1221_v18 = vld [vmem:[%s1525_s28 + $0x50] sm:$0xf] }
  0x1f   : > { %v1278_v11 = vor.u32 %v1391_v9, %v1277_v8  ;;  %v1377_v19 = vld [vmem:[%s1525_s28 + $0x54] sm:$0xf0]  ;;  %v1380_v24 = vld [vmem:[%s1525_s28 + $0x74] sm:$0xf]  ;;  %v1239_v25 = vld [vmem:[%s1525_s28 + $0x78] sm:$0xf0] }
  0x20   : > { %v1222_v22 = vor.u32 %v1377_v19, %v1221_v18  ;;  %v1229_v28 = vld [vmem:[%s1525_s28 + $0x60] sm:$0xf]  ;;  %v1379_v29 = vld [vmem:[%s1525_s28 + $0x64] sm:$0xf0]  ;;  %v1382_v34 = vld [vmem:[%s1525_s28 + $0x84] sm:$0xf] }
  0x21   : > { %647 = vmatpush.bf16.msra.mxu0 %v1400_v13  ;;  %v1395_v31 = vld [vmem:[%s1525_s28 + $0xe4] sm:$0xf0]  ;;  %v1230_v32 = vor.u32 %v1379_v29, %v1229_v28  ;;  %v1247_v35 = vld [vmem:[%s1525_s28 + $0x88] sm:$0xf0]  ;;  %v1301_v40 = vld [vmem:[%s1525_s28 + $0xf0] sm:$0xf] }
  0x22   : > { %1413 = vmatpush.bf16.msra.mxu2 %v1400_v13  ;;  %v1231_v13 = vld [vmem:[%s1525_s28 + $0x68] sm:$0xf0]  ;;  %v1250_v36 = vor.u32 %v1382_v34, %v1247_v35  ;;  %v1397_v41 = vld [vmem:[%s1525_s28 + $0xf4] sm:$0xf0]  ;;  %v1663_v56 = vld [vmem:[%s1840_s2] ss:$0 sm:$0xff] }
  0x23   : > { %v1234_v14 = vor.u32 %v1378_v12, %v1231_v13  ;;  %v1302_v43 = vor.u32 %v1397_v41, %v1301_v40 }
  0x25   : > { %1348 = vmatmul.msk.bf16.gmra.mxu1 %vm593_vm0, %v1194_v16  ;;  %648 = vmatpush.bf16.msra.mxu0 %v1399_v17  ;;  %v1303_v16 = vld [vmem:[%s1525_s28 + $0xf8] sm:$0xf0] }
  0x26   : > { %1414 = vmatpush.bf16.msra.mxu2 %v1399_v17  ;;  %1357 = vmatmul.msk.bf16.gmra.mxu3 %vm593_vm0, %v1266_v20  ;;  %v1306_v17 = vor.u32 %v1396_v15, %v1303_v16  ;;  %v1285_v20 = vld [vmem:[%s1525_s28 + $0xd0] sm:$0xf] }
  0x29   : > { %649 = vmatpush.bf16.msra.mxu0 %v1398_v21 }
  0x2a   : > { %1415 = vmatpush.bf16.msra.mxu2 %v1398_v21  ;;  %v1393_v21 = vld [vmem:[%s1525_s28 + $0xd4] sm:$0xf0] }
  0x2b   : > { %v1286_v23 = vor.u32 %v1393_v21, %v1285_v20 }
  0x2c   : > { %650 = vmatmul.bf16.vlgmr.msra.gmra.mxu0 %v1182_v26  ;;  %v1242_v26 = vor.u32 %v1380_v24, %v1239_v25 }
  0x2d   : > { %690 = vmatmul.bf16.vlgmr.msra.gmra.mxu2 %v1246_v27  ;;  %v1468_v27 = vmov 0.0  }
  0x2e   : > { %273 = vst.msk [vmem:[#allocation2] sm:$0xff] %vm272_vm1, %v1468_v27 }
  0x2f   : > { %274 = vst.msk [vmem:[#allocation2 + $0x8] sm:$0xff] %vm272_vm1, %v1468_v27 }
  0x30   : > { %275 = vst.msk [vmem:[#allocation2 + $0x10] sm:$0xff] %vm272_vm1, %v1468_v27 }
  0x31   : > { %276 = vst.msk [vmem:[#allocation2 + $0x18] sm:$0xff] %vm272_vm1, %v1468_v27 }
  0x32   : > { %277 = vst.msk [vmem:[#allocation2 + $0x20] sm:$0xff] %vm272_vm1, %v1468_v27 }
  0x33   : > { %278 = vst.msk [vmem:[#allocation2 + $0x28] sm:$0xff] %vm272_vm1, %v1468_v27 }
  0x34   : > { %279 = vst.msk [vmem:[#allocation2 + $0x30] sm:$0xff] %vm272_vm1, %v1468_v27 }
  0x35   : > { %1349 = vmatmul.msk.bf16.gmra.mxu1 %vm593_vm0, %v1202_v30  ;;  %v1293_v30 = vld [vmem:[%s1525_s28 + $0xe0] sm:$0xf]  ;;  %280 = vst.msk [vmem:[#allocation2 + $0x38] sm:$0xff] %vm272_vm1, %v1468_v27 }
  0x36   : > { %1358 = vmatmul.msk.bf16.gmra.mxu3 %vm593_vm0, %v1274_v33  ;;  %v1294_v33 = vor.u32 %v1395_v31, %v1293_v30  ;;  %281 = vst.msk [vmem:[#allocation2 + $0x40] sm:$0xff] %vm272_vm1, %v1468_v27  ;;  %v305_v47 = vld [vmem:[#allocation2] sm:$0xff] }
  0x37   : > { %282 = vst.msk [vmem:[#allocation2 + $0x48] sm:$0xff] %vm272_vm1, %v1468_v27  ;;  %v307_v0 = vld [vmem:[#allocation2 + $0x10] sm:$0xff] }
  0x38   : > { %283 = vst.msk [vmem:[#allocation2 + $0x50] sm:$0xff] %vm272_vm1, %v1468_v27  ;;  %v308_v13 = vld [vmem:[#allocation2 + $0x18] sm:$0xff] }
  0x39   : > { %284 = vst.msk [vmem:[#allocation2 + $0x58] sm:$0xff] %vm272_vm1, %v1468_v27 }
  0x3a   : > { %285 = vst.msk [vmem:[#allocation2 + $0x60] sm:$0xff] %vm272_vm1, %v1468_v27 }
  0x3b   : > { %286 = vst.msk [vmem:[#allocation2 + $0x68] sm:$0xff] %vm272_vm1, %v1468_v27 }
  0x3c   : > { %655 = vmatmul.bf16.gmra.mxu0 %v1190_v38  ;;  %287 = vst.msk [vmem:[#allocation2 + $0x70] sm:$0xff] %vm272_vm1, %v1468_v27  ;;  %v1237_v38 = vld [vmem:[%s1525_s28 + $0x70] sm:$0xf] }
  0x3d   : > { %695 = vmatmul.bf16.gmra.mxu2 %v1254_v39  ;;  %288 = vst.msk [vmem:[#allocation2 + $0x78] sm:$0xff] %vm272_vm1, %v1468_v27  ;;  %v1381_v39 = vld [vmem:[%s1525_s28 + $0x74] sm:$0xf0] }
  0x3e   : > { %289 = vst.msk [vmem:[#allocation2 + $0x80] sm:$0xff] %vm272_vm1, %v1468_v27 }
  0x3f   : > { %290 = vst.msk [vmem:[#allocation2 + $0x88] sm:$0xff] %vm272_vm1, %v1468_v27 }
  0x40   : > { %291 = vst.msk [vmem:[#allocation2 + $0x90] sm:$0xff] %vm272_vm1, %v1468_v27 }
  0x41   : > { %292 = vst.msk [vmem:[#allocation2 + $0x98] sm:$0xff] %vm272_vm1, %v1468_v27 }
  0x42   : > { %293 = vst.msk [vmem:[#allocation2 + $0xa0] sm:$0xff] %vm272_vm1, %v1468_v27 }
  0x43   : > { %294 = vst.msk [vmem:[#allocation2 + $0xa8] sm:$0xff] %vm272_vm1, %v1468_v27 }
  0x44   : > { %295 = vst.msk [vmem:[#allocation2 + $0xb0] sm:$0xff] %vm272_vm1, %v1468_v27 }
  0x45   : > { %1350 = vmatmul.msk.bf16.gmra.mxu1 %vm593_vm0, %v1210_v42  ;;  %v1238_v42 = vor.u32 %v1381_v39, %v1237_v38  ;;  %296 = vst.msk [vmem:[#allocation2 + $0xb8] sm:$0xff] %vm272_vm1, %v1468_v27 }
  0x46   : > { %1359 = vmatmul.msk.bf16.gmra.mxu3 %vm593_vm0, %v1282_v45  ;;  %297 = vst.msk [vmem:[#allocation2 + $0xc0] sm:$0xff] %vm272_vm1, %v1468_v27 }
  0x47   : > { %298 = vst.msk [vmem:[#allocation2 + $0xc8] sm:$0xff] %vm272_vm1, %v1468_v27 }
  0x48   : > { %299 = vst.msk [vmem:[#allocation2 + $0xd0] sm:$0xff] %vm272_vm1, %v1468_v27  ;;  %v324_v24 = vld [vmem:[#allocation2 + $0x98] sm:$0xff] }
  0x49   : > { %300 = vst.msk [vmem:[#allocation2 + $0xd8] sm:$0xff] %vm272_vm1, %v1468_v27  ;;  %v325_v41 = vld [vmem:[#allocation2 + $0xa0] sm:$0xff] }
  0x4a   : > { %301 = vst.msk [vmem:[#allocation2 + $0xe0] sm:$0xff] %vm272_vm1, %v1468_v27 }
  0x4b   : > { %302 = vst.msk [vmem:[#allocation2 + $0xe8] sm:$0xff] %vm272_vm1, %v1468_v27 }
  0x4c   : > { %660 = vmatmul.bf16.gmra.mxu0 %v1198_v50  ;;  %303 = vst.msk [vmem:[#allocation2 + $0xf0] sm:$0xff] %vm272_vm1, %v1468_v27 }
  0x4d   : > { %700 = vmatmul.bf16.gmra.mxu2 %v1262_v51  ;;  %304 = vst.msk [vmem:[#allocation2 + $0xf8] sm:$0xff] %vm272_vm1, %v1468_v27  ;;  %v309_v27 = vld [vmem:[#allocation2 + $0x20] sm:$0xff] }
  0x55   : > { %1351 = vmatmul.msk.bf16.gmra.mxu1 %vm593_vm0, %v1218_v54  ;;  %v306_v54 = vld [vmem:[#allocation2 + $0x8] sm:$0xff] }
  0x56   : > { %1360 = vmatmul.msk.bf16.gmra.mxu3 %vm593_vm0, %v1290_v57 }
  0x5c   : > { %665 = vmatmul.bf16.gmra.mxu0 %v1206_v62 }
  0x5d   : > { %705 = vmatmul.bf16.gmra.mxu2 %v1270_v63 }
  0x65   : > { %1352 = vmatmul.msk.bf16.gmra.mxu1 %vm593_vm0, %v1226_v2 }
  0x66   : > { %1361 = vmatmul.msk.bf16.gmra.mxu3 %vm593_vm0, %v1298_v5 }
  0x6c   : > { %670 = vmatmul.bf16.gmra.mxu0 %v1214_v10  ;;  %v323_v10 = vld [vmem:[#allocation2 + $0x90] sm:$0xff] }
  0x6d   : > { %710 = vmatmul.bf16.gmra.mxu2 %v1278_v11 }
  0x75   : > { %1353 = vmatmul.msk.bf16.gmra.mxu1 %vm593_vm0, %v1234_v14 }
  0x76   : > { %1362 = vmatmul.msk.bf16.gmra.mxu3 %vm593_vm0, %v1306_v17 }
  0x7c   : > { %675 = vmatmul.bf16.gmra.mxu0 %v1222_v22 }
  0x7d   : > { %715 = vmatmul.bf16.gmra.mxu2 %v1286_v23 }
  0x85   : > { %1354 = vmatmul.msk.bf16.gmra.mxu1 %vm593_vm0, %v1242_v26 }
  0x8c   : > { %680 = vmatmul.bf16.gmra.mxu0 %v1230_v32 }
  0x8d   : > { %720 = vmatmul.bf16.gmra.mxu2 %v1294_v33 }
  0x92   : > { %v740_v37 = vpop.f32.mrf.mxu1 }
  0x95   : > { %1355 = vmatmul.msk.bf16.gmra.mxu1 %vm593_vm0, %v1250_v36 }
  0x99   : > { %v785_v46 = vpop.f32.mrf.mxu3 }
  0x9a   : > { %v742_v44 = vpop.f32.mrf.mxu1 }
  0x9c   : > { %685 = vmatmul.bf16.gmra.mxu0 %v1238_v42 }
  0x9d   : > { %725 = vmatmul.bf16.gmra.mxu2 %v1302_v43 }
  0xa1   : > { %v787_v53 = vpop.f32.mrf.mxu3 }
  0xa2   : > { %v745_v45 = vpop.f32.mrf.mxu1 }
  0xa9   : > { %v651_v48 = vpop.f32.mrf.mxu0  ;;  %v790_v5 = vpop.f32.mrf.mxu3 }
  0xaa   : > { %v741_v49 = vadd.f32 %v740_v37, %v651_v48  ;;  %v747_v50 = vpop.f32.mrf.mxu1 }
  0xac   : > { %v820_v51 = vadd.f32 %v741_v49, %v305_v47 }
  0xae   : > { %853 = vst.msk [vmem:[#allocation2] sm:$0xff] %vm272_vm1, %v820_v51 }
  0xb0   : > { %v1658_v52 = vpop.f32.mrf.mxu2 }
  0xb1   : > { %v653_v55 = vpop.f32.mrf.mxu0  ;;  %v792_v20 = vpop.f32.mrf.mxu3 }
  0xb2   : > { %v743_v57 = vadd.f32 %v742_v44, %v653_v55  ;;  %v750_v58 = vpop.f32.mrf.mxu1 }
  0xb4   : > { %v821_v59 = vadd.f32 %v743_v57, %v306_v54 }
  0xb5   : > { %v888_v60 = vld [vmem:[#allocation2] sm:$0xff] }
  0xb6   : > { %v924_v61 = vadd.f32 %v1663_v56, %v888_v60  ;;  %854 = vst.msk [vmem:[#allocation2 + $0x8] sm:$0xff] %vm272_vm1, %v821_v59  ;;  %v326_v60 = vld [vmem:[#allocation2 + $0xa8] sm:$0xff] }
  0xb8   : > { %v956_v62 = vmax.f32 %v924_v61, 0.0  ;;  %v1668_v63 = vpop.f32.mrf.mxu2 }
  0xb9   : > { %v656_v1 = vpop.f32.mrf.mxu0  ;;  %v795_v38 = vpop.f32.mrf.mxu3 }
  0xba   : > { %v988_v2 = vpack.c.bf16 %v956_v62, %v956_v62  ;;  %v746_v3 = vadd.f32 %v745_v45, %v656_v1  ;;  %v752_v4 = vpop.f32.mrf.mxu1  ;;  %v310_v45 = vld [vmem:[#allocation2 + $0x28] sm:$0xff] }
  0xbc   : > { %1021 = vst.msk [vmem:[%s1673_s23] sm:$0xf] %vm1020_vm2, %v988_v2  ;;  %v822_v6 = vadd.f32 %v746_v3, %v307_v0  ;;  %v311_v2 = vld [vmem:[#allocation2 + $0x30] sm:$0xff] }
  0xbd   : > { %v889_v7 = vld [vmem:[#allocation2 + $0x8] sm:$0xff] }
  0xbe   : > { %v925_v8 = vadd.f32 %v1663_v56, %v889_v7  ;;  %855 = vst.msk [vmem:[#allocation2 + $0x10] sm:$0xff] %vm272_vm1, %v822_v6 }
  0xc0   : > { %v957_v9 = vmax.f32 %v925_v8, 0.0  ;;  %v696_v11 = vpop.f32.mrf.mxu2 }
  0xc1   : > { %v786_v12 = vadd.f32 %v785_v46, %v696_v11  ;;  %v658_v14 = vpop.f32.mrf.mxu0  ;;  %v797_v62 = vpop.f32.mrf.mxu3 }
  0xc2   : > { %v989_v15 = vpack.c.bf16 %v957_v9, %v957_v9  ;;  %v748_v16 = vadd.f32 %v747_v50, %v658_v14  ;;  %v755_v17 = vpop.f32.mrf.mxu1 }
  0xc3   : > { %v838_v18 = vadd.f32 %v786_v12, %v323_v10 }
  0xc4   : > { %1022 = vst.msk [vmem:[%s1673_s23 + $0x4] sm:$0xf] %vm1020_vm2, %v989_v15  ;;  %v823_v19 = vadd.f32 %v748_v16, %v308_v13  ;;  %v327_v15 = vld [vmem:[#allocation2 + $0xb0] sm:$0xff] }
  0xc5   : > { %v890_v21 = vld [vmem:[#allocation2 + $0x10] sm:$0xff]  ;;  %871 = vst.msk [vmem:[#allocation2 + $0x90] sm:$0xff] %vm272_vm1, %v838_v18 }
  0xc6   : > { %v926_v22 = vadd.f32 %v1663_v56, %v890_v21  ;;  %856 = vst.msk [vmem:[#allocation2 + $0x18] sm:$0xff] %vm272_vm1, %v823_v19  ;;  %v312_v19 = vld [vmem:[#allocation2 + $0x38] sm:$0xff] }
  0xc8   : > { %v958_v23 = vmax.f32 %v926_v22, 0.0  ;;  %v698_v25 = vpop.f32.mrf.mxu2 }
  0xc9   : > { %v788_v26 = vadd.f32 %v787_v53, %v698_v25  ;;  %v661_v28 = vpop.f32.mrf.mxu0 }
  0xca   : > { %v990_v29 = vpack.c.bf16 %v958_v23, %v958_v23  ;;  %v751_v30 = vadd.f32 %v750_v58, %v661_v28  ;;  %v1684_v31 = vpop.f32.mrf.mxu1 }
  0xcb   : > { %v839_v32 = vadd.f32 %v788_v26, %v324_v24  ;;  %v800_v24 = vpop.f32.mrf.mxu3 }
  0xcc   : > { %1023 = vst.msk [vmem:[%s1673_s23 + $0x8] sm:$0xf] %vm1020_vm2, %v990_v29  ;;  %v906_v33 = vld [vmem:[#allocation2 + $0x90] sm:$0xff]  ;;  %v824_v34 = vadd.f32 %v751_v30, %v309_v27 }
  0xcd   : > { %v942_v35 = vadd.f32 %v1663_v56, %v906_v33  ;;  %v891_v36 = vld [vmem:[#allocation2 + $0x18] sm:$0xff]  ;;  %872 = vst.msk [vmem:[#allocation2 + $0x98] sm:$0xff] %vm272_vm1, %v839_v32 }
  0xce   : > { %v927_v37 = vadd.f32 %v1663_v56, %v891_v36  ;;  %857 = vst.msk [vmem:[#allocation2 + $0x20] sm:$0xff] %vm272_vm1, %v824_v34  ;;  %v328_v33 = vld [vmem:[#allocation2 + $0xb8] sm:$0xff] }
  0xcf   : > { %v974_v39 = vmax.f32 %v942_v35, 0.0 }
  0xd0   : > { %v959_v40 = vmax.f32 %v927_v37, 0.0  ;;  %v701_v42 = vpop.f32.mrf.mxu2  ;;  %v313_v37 = vld [vmem:[#allocation2 + $0x40] sm:$0xff] }
  0xd1   : > { %v1006_v43 = vpack.c.bf16 %v974_v39, %v974_v39  ;;  %v791_v44 = vadd.f32 %v790_v5, %v701_v42  ;;  %v663_v46 = vpop.f32.mrf.mxu0 }
  0xd2   : > { %v991_v47 = vpack.c.bf16 %v959_v40, %v959_v40  ;;  %v753_v48 = vadd.f32 %v752_v4, %v663_v46  ;;  %v1692_v49 = vpop.f32.mrf.mxu1 }
  0xd3   : > { %1039 = vst.msk [vmem:[%s1673_s23 + $0x48] sm:$0xf] %vm1020_vm2, %v1006_v43  ;;  %v840_v50 = vadd.f32 %v791_v44, %v325_v41 }
  0xd4   : > { %1024 = vst.msk [vmem:[%s1673_s23 + $0xc] sm:$0xf] %vm1020_vm2, %v991_v47  ;;  %v907_v51 = vld [vmem:[#allocation2 + $0x98] sm:$0xff]  ;;  %v825_v53 = vadd.f32 %v753_v48, %v310_v45  ;;  %v802_v45 = vpop.f32.mrf.mxu3 }
  0xd5   : > { %v943_v54 = vadd.f32 %v1663_v56, %v907_v51  ;;  %v892_v55 = vld [vmem:[#allocation2 + $0x20] sm:$0xff]  ;;  %873 = vst.msk [vmem:[#allocation2 + $0xa0] sm:$0xff] %vm272_vm1, %v840_v50 }
  0xd6   : > { %v928_v57 = vadd.f32 %v1663_v56, %v892_v55  ;;  %858 = vst.msk [vmem:[#allocation2 + $0x28] sm:$0xff] %vm272_vm1, %v825_v53  ;;  %v329_v51 = vld [vmem:[#allocation2 + $0xc0] sm:$0xff] }
  0xd7   : > { %v975_v58 = vmax.f32 %v943_v54, 0.0 }
  0xd8   : > { %v960_v59 = vmax.f32 %v928_v57, 0.0  ;;  %v703_v61 = vpop.f32.mrf.mxu2  ;;  %v314_v57 = vld [vmem:[#allocation2 + $0x48] sm:$0xff] }
  0xd9   : > { %v1007_v0 = vpack.c.bf16 %v975_v58, %v975_v58  ;;  %v793_v1 = vadd.f32 %v792_v20, %v703_v61  ;;  %v666_v3 = vpop.f32.mrf.mxu0 }
  0xda   : > { %v992_v4 = vpack.c.bf16 %v960_v59, %v960_v59  ;;  %v756_v5 = vadd.f32 %v755_v17, %v666_v3  ;;  %v1702_v6 = vpop.f32.mrf.mxu1 }
  0xdb   : > { %1040 = vst.msk [vmem:[%s1673_s23 + $0x4c] sm:$0xf] %vm1020_vm2, %v1007_v0  ;;  %v841_v7 = vadd.f32 %v793_v1, %v326_v60 }
  0xdc   : > { %1025 = vst.msk [vmem:[%s1673_s23 + $0x10] sm:$0xf] %vm1020_vm2, %v992_v4  ;;  %v908_v8 = vld [vmem:[#allocation2 + $0xa0] sm:$0xff]  ;;  %v826_v9 = vadd.f32 %v756_v5, %v311_v2  ;;  %v805_v5 = vpop.f32.mrf.mxu3 }
  0xdd   : > { %v944_v10 = vadd.f32 %v1663_v56, %v908_v8  ;;  %v893_v11 = vld [vmem:[#allocation2 + $0x28] sm:$0xff]  ;;  %874 = vst.msk [vmem:[#allocation2 + $0xa8] sm:$0xff] %vm272_vm1, %v841_v7 }
  0xde   : > { %v929_v12 = vadd.f32 %v1663_v56, %v893_v11  ;;  %859 = vst.msk [vmem:[#allocation2 + $0x30] sm:$0xff] %vm272_vm1, %v826_v9  ;;  %v330_v8 = vld [vmem:[#allocation2 + $0xc8] sm:$0xff] }
  0xdf   : > { %v976_v13 = vmax.f32 %v944_v10, 0.0 }
  0xe0   : > { %v961_v14 = vmax.f32 %v929_v12, 0.0  ;;  %v706_v16 = vpop.f32.mrf.mxu2  ;;  %v315_v12 = vld [vmem:[#allocation2 + $0x50] sm:$0xff] }
  0xe1   : > { %v1008_v17 = vpack.c.bf16 %v976_v13, %v976_v13  ;;  %v796_v18 = vadd.f32 %v795_v38, %v706_v16  ;;  %v668_v20 = vpop.f32.mrf.mxu0 }
  0xe2   : > { %v993_v21 = vpack.c.bf16 %v961_v14, %v961_v14  ;;  %v758_v22 = vadd.f32 %v1684_v31, %v668_v20  ;;  %v1713_v23 = vpop.f32.mrf.mxu1 }
  0xe3   : > { %1041 = vst.msk [vmem:[%s1673_s23 + $0x50] sm:$0xf] %vm1020_vm2, %v1008_v17  ;;  %v842_v25 = vadd.f32 %v796_v18, %v327_v15 }
  0xe4   : > { %1026 = vst.msk [vmem:[%s1673_s23 + $0x14] sm:$0xf] %vm1020_vm2, %v993_v21  ;;  %v909_v26 = vld [vmem:[#allocation2 + $0xa8] sm:$0xff]  ;;  %v827_v27 = vadd.f32 %v758_v22, %v312_v19 }
  0xe5   : > { %v945_v28 = vadd.f32 %v1663_v56, %v909_v26  ;;  %v894_v29 = vld [vmem:[#allocation2 + $0x30] sm:$0xff]  ;;  %875 = vst.msk [vmem:[#allocation2 + $0xb0] sm:$0xff] %vm272_vm1, %v842_v25 }
  0xe6   : > { %v930_v30 = vadd.f32 %v1663_v56, %v894_v29  ;;  %860 = vst.msk [vmem:[#allocation2 + $0x38] sm:$0xff] %vm272_vm1, %v827_v27  ;;  %v331_v25 = vld [vmem:[#allocation2 + $0xd0] sm:$0xff]  ;;  %v807_v27 = vpop.f32.mrf.mxu3 }
  0xe7   : > { %v977_v31 = vmax.f32 %v945_v28, 0.0 }
  0xe8   : > { %v962_v32 = vmax.f32 %v930_v30, 0.0  ;;  %v708_v34 = vpop.f32.mrf.mxu2  ;;  %v316_v30 = vld [vmem:[#allocation2 + $0x58] sm:$0xff] }
  0xe9   : > { %v1009_v35 = vpack.c.bf16 %v977_v31, %v977_v31  ;;  %v798_v36 = vadd.f32 %v797_v62, %v708_v34  ;;  %v671_v38 = vpop.f32.mrf.mxu0 }
  0xea   : > { %v994_v39 = vpack.c.bf16 %v962_v32, %v962_v32  ;;  %v761_v40 = vadd.f32 %v1692_v49, %v671_v38  ;;  %v1724_v41 = vpop.f32.mrf.mxu1 }
  0xeb   : > { %1042 = vst.msk [vmem:[%s1673_s23 + $0x54] sm:$0xf] %vm1020_vm2, %v1009_v35  ;;  %v843_v42 = vadd.f32 %v798_v36, %v328_v33 }
  0xec   : > { %1027 = vst.msk [vmem:[%s1673_s23 + $0x18] sm:$0xf] %vm1020_vm2, %v994_v39  ;;  %v910_v43 = vld [vmem:[#allocation2 + $0xb0] sm:$0xff]  ;;  %v828_v44 = vadd.f32 %v761_v40, %v313_v37 }
  0xed   : > { %v946_v46 = vadd.f32 %v1663_v56, %v910_v43  ;;  %v895_v47 = vld [vmem:[#allocation2 + $0x38] sm:$0xff]  ;;  %876 = vst.msk [vmem:[#allocation2 + $0xb8] sm:$0xff] %vm272_vm1, %v843_v42 }
  0xee   : > { %v931_v48 = vadd.f32 %v1663_v56, %v895_v47  ;;  %861 = vst.msk [vmem:[#allocation2 + $0x40] sm:$0xff] %vm272_vm1, %v828_v44  ;;  %v332_v43 = vld [vmem:[#allocation2 + $0xd8] sm:$0xff]  ;;  %v317_v47 = vld [vmem:[#allocation2 + $0x60] sm:$0xff] }
  0xef   : > { %v978_v49 = vmax.f32 %v946_v46, 0.0 }
  0xf0   : > { %v963_v50 = vmax.f32 %v931_v48, 0.0  ;;  %v711_v53 = vpop.f32.mrf.mxu2 }
  0xf1   : > { %v1010_v54 = vpack.c.bf16 %v978_v49, %v978_v49  ;;  %v801_v55 = vadd.f32 %v800_v24, %v711_v53  ;;  %v673_v58 = vpop.f32.mrf.mxu0 }
  0xf2   : > { %v995_v59 = vpack.c.bf16 %v963_v50, %v963_v50  ;;  %v763_v60 = vadd.f32 %v1702_v6, %v673_v58  ;;  %v1735_v61 = vpop.f32.mrf.mxu1  ;;  %v810_v50 = vpop.f32.mrf.mxu3 }
  0xf3   : > { %1043 = vst.msk [vmem:[%s1673_s23 + $0x58] sm:$0xf] %vm1020_vm2, %v1010_v54  ;;  %v844_v62 = vadd.f32 %v801_v55, %v329_v51 }
  0xf4   : > { %1028 = vst.msk [vmem:[%s1673_s23 + $0x1c] sm:$0xf] %vm1020_vm2, %v995_v59  ;;  %v911_v0 = vld [vmem:[#allocation2 + $0xb8] sm:$0xff]  ;;  %v829_v1 = vadd.f32 %v763_v60, %v314_v57 }
  0xf5   : > { %v947_v2 = vadd.f32 %v1663_v56, %v911_v0  ;;  %v896_v3 = vld [vmem:[#allocation2 + $0x40] sm:$0xff]  ;;  %877 = vst.msk [vmem:[#allocation2 + $0xc0] sm:$0xff] %vm272_vm1, %v844_v62 }
  0xf6   : > { %v932_v4 = vadd.f32 %v1663_v56, %v896_v3  ;;  %862 = vst.msk [vmem:[#allocation2 + $0x48] sm:$0xff] %vm272_vm1, %v829_v1  ;;  %v333_v0 = vld [vmem:[#allocation2 + $0xe0] sm:$0xff] }
  0xf7   : > { %v979_v6 = vmax.f32 %v947_v2, 0.0 }
  0xf8   : > { %v964_v7 = vmax.f32 %v932_v4, 0.0  ;;  %v713_v9 = vpop.f32.mrf.mxu2  ;;  %v318_v4 = vld [vmem:[#allocation2 + $0x68] sm:$0xff] }
  0xf9   : > { %v1011_v10 = vpack.c.bf16 %v979_v6, %v979_v6  ;;  %v803_v11 = vadd.f32 %v802_v45, %v713_v9  ;;  %v676_v13 = vpop.f32.mrf.mxu0 }
  0xfa   : > { %v996_v14 = vpack.c.bf16 %v964_v7, %v964_v7  ;;  %v766_v15 = vadd.f32 %v1713_v23, %v676_v13  ;;  %v1746_v16 = vpop.f32.mrf.mxu1  ;;  %v812_v13 = vpop.f32.mrf.mxu3 }
  0xfb   : > { %1044 = vst.msk [vmem:[%s1673_s23 + $0x5c] sm:$0xf] %vm1020_vm2, %v1011_v10  ;;  %v845_v17 = vadd.f32 %v803_v11, %v330_v8  ;;  %v321_v8 = vld [vmem:[#allocation2 + $0x80] sm:$0xff] }
  0xfc   : > { %1029 = vst.msk [vmem:[%s1673_s23 + $0x20] sm:$0xf] %vm1020_vm2, %v996_v14  ;;  %v912_v18 = vld [vmem:[#allocation2 + $0xc0] sm:$0xff]  ;;  %v830_v19 = vadd.f32 %v766_v15, %v315_v12 }
  0xfd   : > { %v948_v20 = vadd.f32 %v1663_v56, %v912_v18  ;;  %v897_v21 = vld [vmem:[#allocation2 + $0x48] sm:$0xff]  ;;  %878 = vst.msk [vmem:[#allocation2 + $0xc8] sm:$0xff] %vm272_vm1, %v845_v17 }
  0xfe   : > { %v933_v22 = vadd.f32 %v1663_v56, %v897_v21  ;;  %863 = vst.msk [vmem:[#allocation2 + $0x50] sm:$0xff] %vm272_vm1, %v830_v19 }
  0xff   : > { %v980_v23 = vmax.f32 %v948_v20, 0.0  ;;  %v334_v20 = vld [vmem:[#allocation2 + $0xe8] sm:$0xff] }
 0x100   : > { %v965_v24 = vmax.f32 %v933_v22, 0.0  ;;  %v716_v26 = vpop.f32.mrf.mxu2 }
 0x101   : > { %v1012_v28 = vpack.c.bf16 %v980_v23, %v980_v23  ;;  %v806_v29 = vadd.f32 %v805_v5, %v716_v26  ;;  %v678_v31 = vpop.f32.mrf.mxu0 }
 0x102   : > { %v997_v32 = vpack.c.bf16 %v965_v24, %v965_v24  ;;  %v768_v33 = vadd.f32 %v1724_v41, %v678_v31  ;;  %v1757_v34 = vpop.f32.mrf.mxu1  ;;  %v319_v24 = vld [vmem:[#allocation2 + $0x70] sm:$0xff] }
 0x103   : > { %1045 = vst.msk [vmem:[%s1673_s23 + $0x60] sm:$0xf] %vm1020_vm2, %v1012_v28  ;;  %v846_v35 = vadd.f32 %v806_v29, %v331_v25  ;;  %v322_v28 = vld [vmem:[#allocation2 + $0x88] sm:$0xff] }
 0x104   : > { %1030 = vst.msk [vmem:[%s1673_s23 + $0x24] sm:$0xf] %vm1020_vm2, %v997_v32  ;;  %v913_v36 = vld [vmem:[#allocation2 + $0xc8] sm:$0xff]  ;;  %v831_v37 = vadd.f32 %v768_v33, %v316_v30 }
 0x105   : > { %v949_v38 = vadd.f32 %v1663_v56, %v913_v36  ;;  %v898_v39 = vld [vmem:[#allocation2 + $0x50] sm:$0xff]  ;;  %879 = vst.msk [vmem:[#allocation2 + $0xd0] sm:$0xff] %vm272_vm1, %v846_v35 }
 0x106   : > { %v934_v40 = vadd.f32 %v1663_v56, %v898_v39  ;;  %864 = vst.msk [vmem:[#allocation2 + $0x58] sm:$0xff] %vm272_vm1, %v831_v37  ;;  %v815_v39 = vpop.f32.mrf.mxu3 }
 0x107   : > { %v981_v41 = vmax.f32 %v949_v38, 0.0 }
 0x108   : > { %v966_v42 = vmax.f32 %v934_v40, 0.0  ;;  %v718_v44 = vpop.f32.mrf.mxu2 }
 0x109   : > { %v1013_v45 = vpack.c.bf16 %v981_v41, %v981_v41  ;;  %v808_v46 = vadd.f32 %v807_v27, %v718_v44  ;;  %v681_v48 = vpop.f32.mrf.mxu0 }
 0x10a   : > { %v998_v49 = vpack.c.bf16 %v966_v42, %v966_v42  ;;  %v771_v51 = vadd.f32 %v1735_v61, %v681_v48  ;;  %v1768_v53 = vpop.f32.mrf.mxu1  ;;  %v335_v42 = vld [vmem:[#allocation2 + $0xf0] sm:$0xff] }
 0x10b   : > { %1046 = vst.msk [vmem:[%s1673_s23 + $0x64] sm:$0xf] %vm1020_vm2, %v1013_v45  ;;  %v847_v54 = vadd.f32 %v808_v46, %v332_v43 }
 0x10c   : > { %1031 = vst.msk [vmem:[%s1673_s23 + $0x28] sm:$0xf] %vm1020_vm2, %v998_v49  ;;  %v914_v55 = vld [vmem:[#allocation2 + $0xd0] sm:$0xff]  ;;  %v832_v57 = vadd.f32 %v771_v51, %v317_v47  ;;  %v320_v47 = vld [vmem:[#allocation2 + $0x78] sm:$0xff] }
 0x10d   : > { %v950_v58 = vadd.f32 %v1663_v56, %v914_v55  ;;  %v899_v59 = vld [vmem:[#allocation2 + $0x58] sm:$0xff]  ;;  %880 = vst.msk [vmem:[#allocation2 + $0xd8] sm:$0xff] %vm272_vm1, %v847_v54 }
 0x10e   : > { %v935_v60 = vadd.f32 %v1663_v56, %v899_v59  ;;  %865 = vst.msk [vmem:[#allocation2 + $0x60] sm:$0xff] %vm272_vm1, %v832_v57 }
 0x10f   : > { %v982_v61 = vmax.f32 %v950_v58, 0.0 }
 0x110   : > { %v967_v62 = vmax.f32 %v935_v60, 0.0  ;;  %v721_v1 = vpop.f32.mrf.mxu2 }
 0x111   : > { %v1014_v2 = vpack.c.bf16 %v982_v61, %v982_v61  ;;  %v811_v3 = vadd.f32 %v810_v50, %v721_v1  ;;  %v683_v5 = vpop.f32.mrf.mxu0  ;;  %v817_v1 = vpop.f32.mrf.mxu3 }
 0x112   : > { %v999_v6 = vpack.c.bf16 %v967_v62, %v967_v62  ;;  %v773_v7 = vadd.f32 %v1746_v16, %v683_v5  ;;  %v780_v9 = vpop.f32.mrf.mxu1 }
 0x113   : > { %1047 = vst.msk [vmem:[%s1673_s23 + $0x68] sm:$0xf] %vm1020_vm2, %v1014_v2  ;;  %v848_v10 = vadd.f32 %v811_v3, %v333_v0  ;;  %v781_v11 = vadd.f32 %v780_v9, %v1658_v52  ;;  %v336_v2 = vld [vmem:[#allocation2 + $0xf8] sm:$0xff] }
 0x114   : > { %1032 = vst.msk [vmem:[%s1673_s23 + $0x2c] sm:$0xf] %vm1020_vm2, %v999_v6  ;;  %v915_v12 = vld [vmem:[#allocation2 + $0xd8] sm:$0xff]  ;;  %v833_v14 = vadd.f32 %v773_v7, %v318_v4 }
 0x115   : > { %v951_v15 = vadd.f32 %v1663_v56, %v915_v12  ;;  %v900_v17 = vld [vmem:[#allocation2 + $0x60] sm:$0xff]  ;;  %881 = vst.msk [vmem:[#allocation2 + $0xe0] sm:$0xff] %vm272_vm1, %v848_v10  ;;  %v836_v18 = vadd.f32 %v781_v11, %v321_v8 }
 0x116   : > { %v936_v16 = vadd.f32 %v1663_v56, %v900_v17  ;;  %866 = vst.msk [vmem:[#allocation2 + $0x68] sm:$0xff] %vm272_vm1, %v833_v14 }
 0x117   : > { %v983_v19 = vmax.f32 %v951_v15, 0.0  ;;  %869 = vst.msk [vmem:[#allocation2 + $0x80] sm:$0xff] %vm272_vm1, %v836_v18 }
 0x118   : > { %v968_v52 = vmax.f32 %v936_v16, 0.0  ;;  %v723_v21 = vpop.f32.mrf.mxu2 }
 0x119   : > { %v1015_v22 = vpack.c.bf16 %v983_v19, %v983_v19  ;;  %v813_v23 = vadd.f32 %v812_v13, %v723_v21  ;;  %v686_v25 = vpop.f32.mrf.mxu0 }
 0x11a   : > { %v1000_v26 = vpack.c.bf16 %v968_v52, %v968_v52  ;;  %v776_v27 = vadd.f32 %v1757_v34, %v686_v25  ;;  %v782_v29 = vpop.f32.mrf.mxu1 }
 0x11b   : > { %1048 = vst.msk [vmem:[%s1673_s23 + $0x6c] sm:$0xf] %vm1020_vm2, %v1015_v22  ;;  %v849_v30 = vadd.f32 %v813_v23, %v334_v20  ;;  %v783_v31 = vadd.f32 %v782_v29, %v1668_v63 }
 0x11c   : > { %1033 = vst.msk [vmem:[%s1673_s23 + $0x30] sm:$0xf] %vm1020_vm2, %v1000_v26  ;;  %v916_v32 = vld [vmem:[#allocation2 + $0xe0] sm:$0xff]  ;;  %v834_v33 = vadd.f32 %v776_v27, %v319_v24 }
 0x11d   : > { %v952_v35 = vadd.f32 %v1663_v56, %v916_v32  ;;  %v901_v36 = vld [vmem:[#allocation2 + $0x68] sm:$0xff]  ;;  %882 = vst.msk [vmem:[#allocation2 + $0xe8] sm:$0xff] %vm272_vm1, %v849_v30  ;;  %v837_v37 = vadd.f32 %v783_v31, %v322_v28 }
 0x11e   : > { %v937_v38 = vadd.f32 %v1663_v56, %v901_v36  ;;  %v904_v34 = vld [vmem:[#allocation2 + $0x80] sm:$0xff]  ;;  %867 = vst.msk [vmem:[#allocation2 + $0x70] sm:$0xff] %vm272_vm1, %v834_v33 }
 0x11f   : > { %v984_v40 = vmax.f32 %v952_v35, 0.0  ;;  %v940_v63 = vadd.f32 %v1663_v56, %v904_v34  ;;  %870 = vst.msk [vmem:[#allocation2 + $0x88] sm:$0xff] %vm272_vm1, %v837_v37 }
 0x120   : > { %v969_v41 = vmax.f32 %v937_v38, 0.0  ;;  %v726_v43 = vpop.f32.mrf.mxu2 }
 0x121   : > { %v1016_v44 = vpack.c.bf16 %v984_v40, %v984_v40  ;;  %v972_v45 = vmax.f32 %v940_v63, 0.0  ;;  %v816_v46 = vadd.f32 %v815_v39, %v726_v43  ;;  %v688_v48 = vpop.f32.mrf.mxu0 }
 0x122   : > { %v1001_v49 = vpack.c.bf16 %v969_v41, %v969_v41  ;;  %v778_v50 = vadd.f32 %v1768_v53, %v688_v48 }
 0x123   : > { %1049 = vst.msk [vmem:[%s1673_s23 + $0x70] sm:$0xf] %vm1020_vm2, %v1016_v44  ;;  %v1004_v51 = vpack.c.bf16 %v972_v45, %v972_v45  ;;  %v850_v54 = vadd.f32 %v816_v46, %v335_v42 }
 0x124   : > { %1034 = vst.msk [vmem:[%s1673_s23 + $0x34] sm:$0xf] %vm1020_vm2, %v1001_v49  ;;  %v917_v55 = vld [vmem:[#allocation2 + $0xe8] sm:$0xff]  ;;  %v835_v57 = vadd.f32 %v778_v50, %v320_v47 }
 0x125   : > { %1037 = vst.msk [vmem:[%s1673_s23 + $0x40] sm:$0xf] %vm1020_vm2, %v1004_v51  ;;  %v953_v58 = vadd.f32 %v1663_v56, %v917_v55  ;;  %v902_v59 = vld [vmem:[#allocation2 + $0x70] sm:$0xff] }
 0x126   : > { %v938_v60 = vadd.f32 %v1663_v56, %v902_v59  ;;  %v905_v61 = vld [vmem:[#allocation2 + $0x88] sm:$0xff]  ;;  %883 = vst.msk [vmem:[#allocation2 + $0xf0] sm:$0xff] %vm272_vm1, %v850_v54 }
 0x127   : > { %v985_v53 = vmax.f32 %v953_v58, 0.0  ;;  %v941_v62 = vadd.f32 %v1663_v56, %v905_v61  ;;  %868 = vst.msk [vmem:[#allocation2 + $0x78] sm:$0xff] %vm272_vm1, %v835_v57 }
 0x128   : > { %v970_v0 = vmax.f32 %v938_v60, 0.0  ;;  %v728_v3 = vpop.f32.mrf.mxu2 }
 0x129   : > { %v1017_v4 = vpack.c.bf16 %v985_v53, %v985_v53  ;;  %v973_v5 = vmax.f32 %v941_v62, 0.0  ;;  %v818_v6 = vadd.f32 %v817_v1, %v728_v3 }
 0x12a   : > { %v1002_v7 = vpack.c.bf16 %v970_v0, %v970_v0 }
 0x12b   : > { %1050 = vst.msk [vmem:[%s1673_s23 + $0x74] sm:$0xf] %vm1020_vm2, %v1017_v4  ;;  %v1005_v8 = vpack.c.bf16 %v973_v5, %v973_v5  ;;  %v851_v9 = vadd.f32 %v818_v6, %v336_v2 }
 0x12c   : > { %1035 = vst.msk [vmem:[%s1673_s23 + $0x38] sm:$0xf] %vm1020_vm2, %v1002_v7 }
 0x12d   : > { %1038 = vst.msk [vmem:[%s1673_s23 + $0x44] sm:$0xf] %vm1020_vm2, %v1005_v8  ;;  %v918_v10 = vld [vmem:[#allocation2 + $0xf0] sm:$0xff] }
 0x12e   : > { %v954_v11 = vadd.f32 %v1663_v56, %v918_v10  ;;  %v903_v12 = vld [vmem:[#allocation2 + $0x78] sm:$0xff]  ;;  %884 = vst.msk [vmem:[#allocation2 + $0xf8] sm:$0xff] %vm272_vm1, %v851_v9 }
 0x12f   : > { %v939_v13 = vadd.f32 %v1663_v56, %v903_v12 }
 0x130   : > { %v986_v14 = vmax.f32 %v954_v11, 0.0 }
 0x131   : > { %v971_v15 = vmax.f32 %v939_v13, 0.0 }
 0x132   : > { %v1018_v17 = vpack.c.bf16 %v986_v14, %v986_v14 }
 0x133   : > { %v1003_v18 = vpack.c.bf16 %v971_v15, %v971_v15 }
 0x134   : > { %1051 = vst.msk [vmem:[%s1673_s23 + $0x78] sm:$0xf] %vm1020_vm2, %v1018_v17 }
 0x135   : > { %1036 = vst.msk [vmem:[%s1673_s23 + $0x3c] sm:$0xf] %vm1020_vm2, %v1003_v18  ;;  %v919_v16 = vld [vmem:[#allocation2 + $0xf8] sm:$0xff] }
 0x136   : > { %v955_v19 = vadd.f32 %v1663_v56, %v919_v16 }
 0x138   : > { %v987_v52 = vmax.f32 %v955_v19, 0.0 }
 0x13a   : > { %v1019_v20 = vpack.c.bf16 %v987_v52, %v987_v52 }
 0x13c   : > { %1052 = vst.msk [vmem:[%s1673_s23 + $0x7c] sm:$0xf] %vm1020_vm2, %v1019_v20 }
 0x13d PF: > { %s13_s14 = sadd.s32 1, %s1466_s14   ;;  %s1842_s12 = smov %s1462_s13 }
 0x13e   : > { %p10_p5 = scmp.ge.s32.totalorder %s13_s14, 4   ;;  %s1843_s13 = smov %s1845_s15 }
 0x140   :  { %12 = sbr.rel (!%p10_p5) target bundleno = 2 (0x2), region = 76 }

</bundles_post_ra>
